<compile_context>
chip_gen: v7x
topology: tpu7x:2x2x1
jax: 0.10.0
libtpu: 0.0.40
codegen_flags: <defaults>
</compile_context>

<pallas_src>
import functools

import jax
import jax.numpy as jnp
from jax.experimental import pallas as pl
from jax.experimental.pallas import tpu as pltpu


def _adv_loss_kernel(kappa_ref, target_ref, pred_ref, psum_ref, *, true_b, tile_b):
    i = pl.program_id(0)

    pred = pred_ref[...]                       # (TB, C) f32
    tgt = target_ref[...]                      # (TB, 1) i32
    tb, c = pred.shape

    # Boolean target mask via lane-index iota compare (replaces float one-hot).
    lane_idx = jax.lax.broadcasted_iota(jnp.int32, (tb, c), 1)
    is_tgt = lane_idx == tgt                                                   # (TB, C) bool

    # real_i = pred[i, target_i]
    real = jnp.sum(jnp.where(is_tgt, pred, 0.0), axis=1, keepdims=True)        # (TB, 1)
    # other_i = max over non-target classes; target class pinned to -10000,
    # matching (1 - tlab) * pred - tlab * 10000 exactly.
    other = jnp.max(jnp.where(is_tgt, -10000.0, pred), axis=1, keepdims=True)  # (TB, 1)

    kappa = kappa_ref[0, 0]
    hinge = jnp.maximum(0.0, other - real + kappa)                             # (TB, 1)

    # Mask padded tail rows of the last tile (B % TB != 0 case).
    row_id = i * tile_b + jax.lax.broadcasted_iota(jnp.int32, (tb, 1), 0)
    hinge = jnp.where(row_id < true_b, hinge, 0.0)

    # Per-tile partial sum; mean is finished in the wrapper.
    psum_ref[...] = jnp.sum(hinge, axis=0, keepdims=True)                      # (1, 1)


def get_adv_loss_pallas(pred, target, kappa=0.0, num_class=None, block_b=4096):
    """pred: (B, num_class) f32, target: (B,) or (B,1) int, kappa: scalar float."""
    pred = jnp.asarray(pred, dtype=jnp.float32)
    B, C = pred.shape
    if num_class is None:
        num_class = C
    assert C == num_class

    target = jnp.asarray(target).reshape(B, 1).astype(jnp.int32)   # target.squeeze() -> one column
    kappa_arr = jnp.asarray(kappa, dtype=jnp.float32).reshape(1, 1)

    # Batch tile: as big as possible (bigger tiles -> closer to the HBM streaming
    # roofline), but capped so one pred tile is ~8 MiB.  Double-buffered that is
    # ~16 MiB, comfortably inside the 32 MiB scoped-VMEM limit we request below
    # (safe on v5e/v6e's 128 MiB and v7x's 64 MiB physical VMEM).
    vmem_per_pred_tile = 8 * 1024 * 1024
    max_rows_for_vmem = max(8, vmem_per_pred_tile // (C * 4))
    tb = min(block_b, B, max_rows_for_vmem)
    if tb < B:
        tb = max(8, (tb // 8) * 8)          # sublane-aligned tiles when actually tiling
    num_tiles = pl.cdiv(B, tb)

    kernel = functools.partial(_adv_loss_kernel, true_b=B, tile_b=tb)

    partials = pl.pallas_call(
        kernel,
        out_shape=jax.ShapeDtypeStruct((num_tiles, 1), jnp.float32),
        grid=(num_tiles,),
        in_specs=[
            pl.BlockSpec(memory_space=pltpu.SMEM),        # kappa scalar (1,1), whole array
            pl.BlockSpec((tb, 1), lambda i: (i, 0)),      # target batch tile
            pl.BlockSpec((tb, C), lambda i: (i, 0)),      # pred batch tile (double-buffered)
        ],
        out_specs=pl.BlockSpec((1, 1), lambda i: (i, 0)),  # per-tile partial hinge-sum
        compiler_params=pltpu.CompilerParams(
            # Partial sums are independent per tile -> parallel batch axis
            # (lets v7x's two TensorCores split the pred stream).
            dimension_semantics=("parallel",),
            vmem_limit_bytes=32 * 1024 * 1024,
        ),
        cost_estimate=pl.CostEstimate(
            flops=4 * B * C,
            transcendentals=0,
            bytes_accessed=B * C * 4 + B * 4 + num_tiles * 4 + 8,
        ),
    )(kappa_arr, target, pred)

    # Finish the mean with the true batch size (not num_tiles * tb).
    return jnp.sum(partials) / B


def _reference(pred, target, kappa=0.0):
    # pure-JAX reference mirroring the PyTorch forward
    num_class = pred.shape[1]
    tlab = jax.nn.one_hot(jnp.squeeze(target), num_class, dtype=pred.dtype)
    real = jnp.sum(tlab * pred, axis=1)
    other = jnp.max((1 - tlab) * pred - tlab * 10000.0, axis=1)
    loss1 = jnp.maximum(0.0, other - real + kappa)
    return jnp.mean(loss1)


if __name__ == "__main__":
    key = jax.random.PRNGKey(0)

    # Case 1: single-tile path (small batch).
    B, NUM_CLASS = 8, 16
    k_pred, k_tgt, k2_pred, k2_tgt = jax.random.split(key, 4)
    pred = jax.random.normal(k_pred, (B, NUM_CLASS), dtype=jnp.float32)
    target = jax.random.randint(k_tgt, (B, 1), 0, NUM_CLASS, dtype=jnp.int32)
    kappa = 0.5

    loss = get_adv_loss_pallas(pred, target, kappa=kappa, num_class=NUM_CLASS)
    loss = jax.block_until_ready(loss)
    ref = _reference(pred, target, kappa=kappa)
    assert jnp.allclose(loss, ref, atol=1e-5, rtol=1e-5), (loss, ref)

    # Case 2: multi-tile path with ragged tail (exercises grid + tail masking).
    B2 = 20
    pred2 = jax.random.normal(k2_pred, (B2, NUM_CLASS), dtype=jnp.float32)
    target2 = jax.random.randint(k2_tgt, (B2, 1), 0, NUM_CLASS, dtype=jnp.int32)

    loss2 = get_adv_loss_pallas(pred2, target2, kappa=0.0, num_class=NUM_CLASS, block_b=8)
    loss2 = jax.block_until_ready(loss2)
    ref2 = _reference(pred2, target2, kappa=0.0)
    assert jnp.allclose(loss2, ref2, atol=1e-5, rtol=1e-5), (loss2, ref2)

    print("KERNEL_OK")
</pallas_src>

<mosaic_0001>
module attributes {stable_mosaic.version = 11 : i64} {
  func.func @_adv_loss_kernel(%arg0: i32, %arg1: memref<1x1xf32, #tpu.memory_space<smem>>, %arg2: memref<8x1xi32, #tpu.memory_space<vmem>>, %arg3: memref<8x16xf32, #tpu.memory_space<vmem>>, %arg4: memref<1x1xf32, #tpu.memory_space<vmem>>) attributes {dimension_semantics = [#tpu.dimension_semantics<parallel>], iteration_bounds = array<i64: 1>, scalar_prefetch = 0 : i64, scratch_operands = 0 : i64, tpu.core_type = #tpu.core_type<tc>, window_params = [{transform_indices = @transform_0, window_bounds = array<i64: 1, 1>}, {transform_indices = @transform_1, window_bounds = array<i64: 8, 1>}, {transform_indices = @transform_2, window_bounds = array<i64: 8, 16>}, {transform_indices = @transform_3, window_bounds = array<i64: 1, 1>}]} {
    %c0 = arith.constant 0 : index
    %c0_0 = arith.constant 0 : index
    %0 = vector.load %arg3[%c0, %c0_0] : memref<8x16xf32, #tpu.memory_space<vmem>>, vector<8x16xf32>
    %c0_1 = arith.constant 0 : index
    %c0_2 = arith.constant 0 : index
    %1 = vector.load %arg2[%c0_1, %c0_2] : memref<8x1xi32, #tpu.memory_space<vmem>>, vector<8x1xi32>
    %2 = tpu.iota {dimensions = array<i32: 1>} : vector<8x16xi32>
    %3 = vector.broadcast %1 : vector<8x1xi32> to vector<8x16xi32>
    %4 = arith.cmpi eq, %2, %3 : vector<8x16xi32>
    %cst = arith.constant 0.000000e+00 : f32
    %5 = vector.broadcast %cst : f32 to vector<8x16xf32>
    %6 = arith.select %4, %0, %5 : vector<8x16xi1>, vector<8x16xf32>
    %cst_3 = arith.constant dense<0.000000e+00> : vector<8xf32>
    %7 = vector.multi_reduction <add>, %6, %cst_3 [1] : vector<8x16xf32> to vector<8xf32>
    %8 = vector.shape_cast %7 : vector<8xf32> to vector<8x1xf32>
    %cst_4 = arith.constant -1.000000e+04 : f32
    %9 = vector.broadcast %cst_4 : f32 to vector<8x16xf32>
    %10 = arith.select %4, %9, %0 : vector<8x16xi1>, vector<8x16xf32>
    %cst_5 = arith.constant dense<0xFF800000> : vector<8xf32>
    %11 = vector.multi_reduction <maximumf>, %10, %cst_5 [1] : vector<8x16xf32> to vector<8xf32>
    %12 = vector.shape_cast %11 : vector<8xf32> to vector<8x1xf32>
    %c0_6 = arith.constant 0 : index
    %c0_7 = arith.constant 0 : index
    %13 = memref.load %arg1[%c0_6, %c0_7] : memref<1x1xf32, #tpu.memory_space<smem>>
    %14 = arith.subf %12, %8 : vector<8x1xf32>
    %15 = vector.broadcast %13 : f32 to vector<8x1xf32>
    %16 = arith.addf %14, %15 : vector<8x1xf32>
    %cst_8 = arith.constant 0.000000e+00 : f32
    %17 = vector.broadcast %cst_8 : f32 to vector<8x1xf32>
    %18 = arith.maximumf %17, %16 : vector<8x1xf32>
    %c8_i32 = arith.constant 8 : i32
    %19 = arith.muli %arg0, %c8_i32 : i32
    %20 = tpu.iota {dimensions = array<i32: 0>} : vector<8x1xi32>
    %21 = vector.broadcast %19 : i32 to vector<8x1xi32>
    %22 = arith.addi %21, %20 : vector<8x1xi32>
    %c8_i32_9 = arith.constant 8 : i32
    %23 = vector.broadcast %c8_i32_9 : i32 to vector<8x1xi32>
    %24 = arith.cmpi slt, %22, %23 : vector<8x1xi32>
    %cst_10 = arith.constant 0.000000e+00 : f32
    %25 = vector.broadcast %cst_10 : f32 to vector<8x1xf32>
    %26 = arith.select %24, %18, %25 : vector<8x1xi1>, vector<8x1xf32>
    %cst_11 = arith.constant dense<0.000000e+00> : vector<1xf32>
    %27 = vector.multi_reduction <add>, %26, %cst_11 [0] : vector<8x1xf32> to vector<1xf32>
    %28 = vector.shape_cast %27 : vector<1xf32> to vector<1x1xf32>
    %c0_12 = arith.constant 0 : index
    %c0_13 = arith.constant 0 : index
    %29 = vector.load %arg4[%c0_12, %c0_13] : memref<1x1xf32, #tpu.memory_space<vmem>>, vector<1x1xf32>
    tpu.vector_store %arg4[%c0_12, %c0_13], %28 {strides = array<i32>} : memref<1x1xf32, #tpu.memory_space<vmem>>, vector<1x1xf32>,
    return
  }
  func.func @transform_0(%arg0: i32) -> (i32, i32) {
    %c0_i32 = arith.constant 0 : i32
    %c0_i32_0 = arith.constant 0 : i32
    %c0_i32_1 = arith.constant 0 : i32
    return %c0_i32, %c0_i32_0 : i32, i32
  }
  func.func @transform_1(%arg0: i32) -> (i32, i32) {
    %c0_i32 = arith.constant 0 : i32
    %c0_i32_0 = arith.constant 0 : i32
    return %arg0, %c0_i32 : i32, i32
  }
  func.func @transform_2(%arg0: i32) -> (i32, i32) {
    %c0_i32 = arith.constant 0 : i32
    %c0_i32_0 = arith.constant 0 : i32
    return %arg0, %c0_i32 : i32, i32
  }
  func.func @transform_3(%arg0: i32) -> (i32, i32) {
    %c0_i32 = arith.constant 0 : i32
    %c0_i32_0 = arith.constant 0 : i32
    return %arg0, %c0_i32 : i32, i32
  }
}

</mosaic_0001>

<bundles_post_ra>
// kernel: tpu_custom_call.1
= control target key start
LH: loop header
LB: loop body
LE: loop exit
PB: predicated region body
PF: predicated region fallthrough
CT: control target
= control target key end

     0   :  { %s137_s0 = inlined_call_operand.<no memory space> [shape: f32[1,1], index: 0, kind: input, shape index: {}]   ;;  %s138_s1 = inlined_call_operand.vmem [shape: s32[8,1], index: 1, kind: input, shape index: {}]   ;;  %s139_s2 = inlined_call_operand.vmem [shape: f32[8,16], index: 2, kind: input, shape index: {}]   ;;  %s140_s3 = inlined_call_operand.hbm [shape: f32[1,1], index: 3, kind: output, shape index: {}]  }
   0x1   :  { %v17_v0 = vld [vmem:[%s138_s1] sm:$0xff] }
   0x2   :  { %9 = vsyncpa [#allocation4], 0  ;;  %v94_v1 = vmov 0   ;;  %v18_v2 = vlaneseq  ;;  %v16_v4 = vld [vmem:[%s139_s2] sm:$0xff]  ;;  %vm25_vm0 = vcmask 130048   ;;  %v35_v11 = vstv %s137_s0  ;;  %s95_s2 = smov [#allocation3]  }
   0x3   :  { %69 = vset.pattern.permute.xlu0 %v94_v1  ;;  %s59_s17 = sshll.u32 %s95_s2, 4  ;;  %vm51_vm2 = vcmask 0   ;;  %s60_s17 = int_to_ptr.vmem [resolvable:$true] %s59_s17 }
   0x4   :  { %21 = vperm.xlu0 %69, %v17_v0   ;;  %v19_v3 = vand.u32 127, %v18_v2  ;;  %s70_s18 = scalar_lea.vmem %s60_s17, 16  ;;  %s74_s19 = scalar_lea.vmem %s60_s17, 32 }
   0x5   :  { %p71_p0 = scmp.ne.s32.totalorder %s60_s17, %s70_s18  ;;  %p75_p1 = scmp.lt.s32.totalorder %s60_s17, %s60_s17 }
   0x6   :  { %p76_p2 = scmp.lt.s32.totalorder %s74_s19, %s70_s18 }
   0x8   :  { %p77_p3 = por %p76_p2, %p75_p1 }
   0xa   :  { %p78_p4 = pnand %p77_p3, %p71_p0 }
  0x83   :  { %v22_v5 = vpop.permute.xlu0 %21 }
  0x84   :  { %vm23_vm1 = vcmp.eq.s32.totalorder %v19_v3, %v22_v5 }
  0x85   :  { %v29_v6 = vsel %vm23_vm1, -10000.0, %v16_v4  ;;  %v24_v7 = vsel %vm23_vm1, %v16_v4, 0.0 }
  0x86   :  { %v30_v8 = vsel %vm25_vm0, %v29_v6, -inf  ;;  %v26_v9 = vsel %vm25_vm0, %v24_v7, 0.0 }
  0x87   :  { %31 = vmax.xlane.f32.xlu1 %v30_v8  ;;  %27 = vadd.xlane.f32.xlu0 %v26_v9 }
 0x114   :  { %v32_v10 = vpop.xlane.xlu1 %31  ;;  %v28_v12 = vpop.xlane.xlu0 %27 }
 0x115   :  { %v34_v13 = vsub.f32 %v32_v10, %v28_v12 }
 0x117   :  { %v36_v14 = vadd.f32 %v35_v11, %v34_v13 }
 0x119   :  { %v37_v15 = vmax.f32 %v36_v14, 0.0 }
 0x11b   :  { %v45_v16 = vrot.slane %v37_v15, 4 }
 0x11d   :  { %v46_v17 = vadd.f32 %v45_v16, %v37_v15 }
 0x11f   :  { %v47_v18 = vrot.slane %v46_v17, 2 }
 0x121   :  { %v48_v19 = vadd.f32 %v47_v18, %v46_v17 }
 0x123   :  { %v49_v20 = vrot.slane %v48_v19, 1 }
 0x125   :  { %v50_v21 = vadd.f32 %v49_v20, %v48_v19 }
 0x127   :  { %52 = vst.msk [vmem:[#allocation3] sm:$0x1] %vm51_vm2, %v50_v21 }
 0x128   :  { %81 = shalt.err (!%p78_p4)
}
 0x129   :  { %s82_s21 = scalar_lea.hbm %s140_s3, 16 }
 0x12a   :  { %p83_p5 = scmp.ne.s32.totalorder %s140_s3, %s82_s21  ;;  %p86_p6 = scmp.lt.u32.totalorder %s82_s21, %s140_s3 }
 0x12c   :  { %p88_p7 = pnand %p86_p6, %p83_p5 }
 0x12e   :  { %91 = shalt.err (!%p88_p7)
}
 0x12f   :  { %62 = dma.vmem_to_hbm [thread:$0]  %s60_s17, 16, %s140_s3, [#allocation4]  }
 0x130   :  { %92 = dma.done.wait [#allocation4], 16  }
 0x131   :  { %93 = vsyncadd [#allocation4], 4294967280 }
 0x132   :  { %66 = vsyncpa [#allocation4], 1 }

</bundles_post_ra>
